<compile_context>
chip_gen: v7x
topology: tpu7x:2x2x1
jax: 0.10.0
libtpu: 0.0.40
codegen_flags: <defaults>
</compile_context>

<pallas_src>
import functools
import math

import jax
import jax.numpy as jnp
from jax.experimental import pallas as pl
from jax.experimental.pallas import tpu as pltpu


# --------------------------------------------------------------------------- #
# Kernels
# --------------------------------------------------------------------------- #
def _affine_store(xc, inv_denom, w_ref, b_ref, o_ref, affine_bf16):
    if affine_bf16:
        # bf16 VALU packs 2 elem/lane-op (v6e/v7x); reductions already done in f32.
        y = (xc.astype(jnp.bfloat16) * inv_denom.astype(jnp.bfloat16)
             * w_ref[...].astype(jnp.bfloat16) + b_ref[...].astype(jnp.bfloat16))
    else:
        y = xc * inv_denom * w_ref[...].astype(jnp.float32) + b_ref[...].astype(jnp.float32)
    o_ref[...] = y.astype(o_ref.dtype)


def _layernorm_rowwise_kernel(x_ref, w_ref, b_ref, o_ref, *, inv_f, eps, affine_bf16):
    """One feature vector per row of the block (used when F is 128-aligned)."""
    x = x_ref[...].astype(jnp.float32)                          # (TR, F)
    mean = jnp.sum(x, axis=-1, keepdims=True) * inv_f           # (TR, 1)
    xc = x - mean
    var = jnp.sum(xc * xc, axis=-1, keepdims=True) * inv_f      # (TR, 1)
    inv_denom = pl.reciprocal(jnp.sqrt(var) + eps, approx=False)  # eps AFTER sqrt
    _affine_store(xc, inv_denom, w_ref, b_ref, o_ref, affine_bf16)


def _layernorm_folded_kernel(x_ref, w_ref, b_ref, seg_ref, segt_ref, o_ref, *,
                             inv_f, eps, affine_bf16):
    """g feature vectors folded into the (128-aligned) lane dim.

    Segmented reduce / broadcast is expressed as matmuls with a tiny 0/1
    segment matrix so the reductions run on the MXU and every VPU/store op
    stays lane-dense.
    """
    x = x_ref[...].astype(jnp.float32)                           # (TR, G=g*F)
    seg = seg_ref[...]                                           # (G, g), 0/1 f32
    seg_t = segt_ref[...]                                        # (g, G)
    mean = jnp.dot(x, seg, preferred_element_type=jnp.float32) * inv_f           # (TR, g)
    xc = x - jnp.dot(mean, seg_t, preferred_element_type=jnp.float32)            # (TR, G)
    var = jnp.dot(xc * xc, seg, preferred_element_type=jnp.float32) * inv_f      # (TR, g)
    inv_seg = pl.reciprocal(jnp.sqrt(var) + eps, approx=False)                   # (TR, g)
    inv_denom = jnp.dot(inv_seg, seg_t, preferred_element_type=jnp.float32)      # (TR, G)
    _affine_store(xc, inv_denom, w_ref, b_ref, o_ref, affine_bf16)


# --------------------------------------------------------------------------- #
# Tiling / layout helpers
# --------------------------------------------------------------------------- #
def _cdiv(a, b):
    return -(-a // b)


def _is_v5e():
    try:
        kind = jax.devices()[0].device_kind.lower()
        return ("v5e" in kind) or ("v5 lite" in kind) or ("v5lite" in kind)
    except Exception:
        return False


def _vmem_limit_bytes():
    """Generation-aware scoped-VMEM limit."""
    try:
        cap = int(getattr(pltpu.get_tpu_info(), "vmem_capacity_bytes", 128 * 1024 * 1024))
    except Exception:
        cap = 128 * 1024 * 1024
    if cap <= 64 * 1024 * 1024:          # v7x-class: 64 MiB physical per TC
        return 48 * 1024 * 1024
    return 64 * 1024 * 1024              # v5e / v6e: 128 MiB physical


_MAX_FOLDED_LANES = 2048


def _fold_factor(total_rows, feature_dim):
    """How many rows to fold into the lane dim to make it 128-aligned."""
    if feature_dim % 128 == 0:
        return 1
    g = 128 // math.gcd(feature_dim, 128)   # minimal g with g*F % 128 == 0
    if g > 1 and total_rows % g == 0 and g * feature_dim <= _MAX_FOLDED_LANES:
        return g
    return 1


def _pick_row_tile(total_rows, lane_dim, itemsize, vmem_limit):
    """Row-tile size: large dtype-aware tiles, (8,128)-rule compliant, >= ~8 grid steps."""
    row_align = 16 if itemsize == 2 else 8
    # Leave headroom for Mosaic internal scratch + the resident w/b/seg blocks.
    budget = (vmem_limit * 3) // 5
    # Per tile row we pay: 2x double-buffered input + 2x double-buffered output
    # (in x.dtype) plus ~3 full-tile f32 temporaries (x_f32, xc, y) in-kernel.
    bytes_per_row = lane_dim * (4 * itemsize + 3 * 4)
    tr = max(1, budget // bytes_per_row)
    # Keep >= ~8 grid steps so v7x's two TensorCores each get several steps and
    # the DMA pipeline has room to overlap prefetch/compute/writeback.
    tr = min(tr, max(row_align, _cdiv(total_rows, 8)))
    if tr >= total_rows:
        return total_rows                    # single full block (no align constraint)
    return max(row_align, (tr // row_align) * row_align)


# --------------------------------------------------------------------------- #
# Wrapper
# --------------------------------------------------------------------------- #
def set_layer_norm(x, weights, biases, *, eps=1e-5, lengths=None):
    """Pallas TPU implementation of the set LayerNorm forward (lengths=None)."""
    if lengths is not None:
        # TODO(synk): apply_masks / variable-length path not implemented.
        raise NotImplementedError("lengths masking path is not implemented")

    B, N, F = x.shape
    assert weights.shape == (F,) and biases.shape == (F,)

    total_rows = B * N
    g = _fold_factor(total_rows, F)          # rows folded into the lane dim
    G = g * F                                # lane dim of the kernel blocks
    rows = total_rows // g

    x2 = x.reshape(rows, G)                  # free reshape (row-major contiguity)
    w2 = (jnp.tile(weights, g) if g > 1 else weights).reshape(1, G)
    b2 = (jnp.tile(biases, g) if g > 1 else biases).reshape(1, G)

    vmem_limit = _vmem_limit_bytes()
    tr = _pick_row_tile(rows, G, jnp.dtype(x.dtype).itemsize, vmem_limit)
    grid = (_cdiv(rows, tr),)

    # bf16 affine/store only when the data is bf16 and the chip has bf16 VALU.
    affine_bf16 = (x.dtype == jnp.bfloat16) and not _is_v5e()

    x_spec = pl.BlockSpec((tr, G), lambda i: (i, 0))
    wb_spec = pl.BlockSpec((1, G), lambda i: (0, 0))       # resident across steps
    out_spec = pl.BlockSpec((tr, G), lambda i: (i, 0))

    if g > 1:
        seg_ids = jnp.arange(G, dtype=jnp.int32) // F
        seg = (seg_ids[:, None] == jnp.arange(g, dtype=jnp.int32)[None, :]).astype(jnp.float32)
        seg_t = jnp.transpose(seg)
        kernel = functools.partial(_layernorm_folded_kernel, inv_f=1.0 / F, eps=eps,
                                   affine_bf16=affine_bf16)
        in_specs = [x_spec, wb_spec, wb_spec,
                    pl.BlockSpec((G, g), lambda i: (0, 0)),   # resident
                    pl.BlockSpec((g, G), lambda i: (0, 0))]   # resident
        args = (x2, w2, b2, seg, seg_t)
    else:
        kernel = functools.partial(_layernorm_rowwise_kernel, inv_f=1.0 / F, eps=eps,
                                   affine_bf16=affine_bf16)
        in_specs = [x_spec, wb_spec, wb_spec]
        args = (x2, w2, b2)

    out = pl.pallas_call(
        kernel,
        out_shape=jax.ShapeDtypeStruct((rows, G), x.dtype),
        grid_spec=pltpu.PrefetchScalarGridSpec(
            num_scalar_prefetch=0,
            grid=grid,
            in_specs=in_specs,
            out_specs=out_spec,
        ),
        compiler_params=pltpu.CompilerParams(
            dimension_semantics=("parallel",),      # shard rows across TCs (v7x)
            vmem_limit_bytes=vmem_limit,
        ),
    )(*args)

    return out.reshape(B, N, F)


# --------------------------------------------------------------------------- #
# Reference + test
# --------------------------------------------------------------------------- #
def _reference(x, weights, biases, eps=1e-5):
    x = x.astype(jnp.float32)
    F = x.shape[-1]
    means = jnp.sum(x, axis=-1) / F
    xc = x - means[:, :, None]
    vars_ = jnp.sum(xc * xc, axis=-1) / F
    y = xc / (jnp.sqrt(vars_)[:, :, None] + eps)
    return y * weights.astype(jnp.float32) + biases.astype(jnp.float32)


if __name__ == "__main__":
    key = jax.random.PRNGKey(0)
    kx, kw, kb, kx2 = jax.random.split(key, 4)

    # --- Test 1: F=32 (folded lane-dense path), init params (weights=1, biases=0)
    B, N, F = 2, 8, 32
    x = jax.random.normal(kx, (B, N, F), dtype=jnp.float32)
    w_init = jnp.ones((F,), dtype=jnp.float32)
    b_init = jnp.zeros((F,), dtype=jnp.float32)
    out = jax.block_until_ready(set_layer_norm(x, w_init, b_init, eps=1e-5))
    ref = _reference(x, w_init, b_init, eps=1e-5)
    assert out.shape == (B, N, F)
    assert jnp.allclose(out, ref, atol=1e-5, rtol=1e-5), "mismatch (init params)"

    # --- Test 2: F=32, non-trivial affine parameters
    w_rand = jax.random.normal(kw, (F,), dtype=jnp.float32)
    b_rand = jax.random.normal(kb, (F,), dtype=jnp.float32)
    out2 = jax.block_until_ready(set_layer_norm(x, w_rand, b_rand, eps=1e-5))
    ref2 = _reference(x, w_rand, b_rand, eps=1e-5)
    assert jnp.allclose(out2, ref2, atol=1e-5, rtol=1e-5), "mismatch (random affine)"

    # --- Test 3: F=128 (row-wise path, multi-step grid)
    B3, N3, F3 = 2, 64, 128
    x3 = jax.random.normal(kx2, (B3, N3, F3), dtype=jnp.float32)
    w3 = jax.random.normal(kw, (F3,), dtype=jnp.float32)
    b3 = jax.random.normal(kb, (F3,), dtype=jnp.float32)
    out3 = jax.block_until_ready(set_layer_norm(x3, w3, b3, eps=1e-5))
    ref3 = _reference(x3, w3, b3, eps=1e-5)
    assert jnp.allclose(out3, ref3, atol=1e-5, rtol=1e-5), "mismatch (F=128)"

    # --- Test 4: bf16 inputs (exercises bf16 affine/store on non-v5e chips)
    xb = x.astype(jnp.bfloat16)
    outb = jax.block_until_ready(set_layer_norm(xb, w_rand, b_rand, eps=1e-5))
    refb = _reference(xb, w_rand, b_rand, eps=1e-5)
    assert jnp.allclose(outb.astype(jnp.float32), refb, atol=1e-1, rtol=1e-1), \
        "mismatch (bf16)"

    print("KERNEL_OK")
</pallas_src>

<mosaic_0001>
module attributes {stable_mosaic.version = 11 : i64} {
  func.func @_layernorm_folded_kernel(%arg0: i32, %arg1: memref<4x128xf32, #tpu.memory_space<vmem>>, %arg2: memref<1x128xf32, #tpu.memory_space<vmem>>, %arg3: memref<1x128xf32, #tpu.memory_space<vmem>>, %arg4: memref<128x4xf32, #tpu.memory_space<vmem>>, %arg5: memref<4x128xf32, #tpu.memory_space<vmem>>, %arg6: memref<4x128xf32, #tpu.memory_space<vmem>>) attributes {dimension_semantics = [#tpu.dimension_semantics<parallel>], iteration_bounds = array<i64: 1>, scalar_prefetch = 0 : i64, scratch_operands = 0 : i64, tpu.core_type = #tpu.core_type<tc>, window_params = [{transform_indices = @transform_0, window_bounds = array<i64: 4, 128>}, {pipeline_mode = #tpu.pipeline_mode<synchronous>, transform_indices = @transform_1, window_bounds = array<i64: 1, 128>}, {pipeline_mode = #tpu.pipeline_mode<synchronous>, transform_indices = @transform_2, window_bounds = array<i64: 1, 128>}, {pipeline_mode = #tpu.pipeline_mode<synchronous>, transform_indices = @transform_3, window_bounds = array<i64: 128, 4>}, {pipeline_mode = #tpu.pipeline_mode<synchronous>, transform_indices = @transform_4, window_bounds = array<i64: 4, 128>}, {transform_indices = @transform_5, window_bounds = array<i64: 4, 128>}]} {
    %c0 = arith.constant 0 : index
    %c0_0 = arith.constant 0 : index
    %0 = vector.load %arg1[%c0, %c0_0] : memref<4x128xf32, #tpu.memory_space<vmem>>, vector<4x128xf32>
    %c0_1 = arith.constant 0 : index
    %c0_2 = arith.constant 0 : index
    %1 = vector.load %arg4[%c0_1, %c0_2] : memref<128x4xf32, #tpu.memory_space<vmem>>, vector<128x4xf32>
    %c0_3 = arith.constant 0 : index
    %c0_4 = arith.constant 0 : index
    %2 = vector.load %arg5[%c0_3, %c0_4] : memref<4x128xf32, #tpu.memory_space<vmem>>, vector<4x128xf32>
    %cst = arith.constant dense<0.000000e+00> : vector<4x4xf32>
    %3 = tpu.matmul %0, %1, %cst {dimension_numbers = #tpu.dot_dimension_numbers<[1], [0], [0], [1], [0, 0, 1, 1], [], []>} : vector<4x128xf32>, vector<128x4xf32>, vector<4x4xf32> -> vector<4x4xf32>
    %cst_5 = arith.constant 3.125000e-02 : f32
    %4 = vector.broadcast %cst_5 : f32 to vector<4x4xf32>
    %5 = arith.mulf %3, %4 : vector<4x4xf32>
    %cst_6 = arith.constant dense<0.000000e+00> : vector<4x128xf32>
    %6 = tpu.matmul %5, %2, %cst_6 {dimension_numbers = #tpu.dot_dimension_numbers<[1], [0], [0], [1], [0, 0, 1, 1], [], []>} : vector<4x4xf32>, vector<4x128xf32>, vector<4x128xf32> -> vector<4x128xf32>
    %7 = arith.subf %0, %6 : vector<4x128xf32>
    %8 = arith.mulf %7, %7 : vector<4x128xf32>
    %cst_7 = arith.constant dense<0.000000e+00> : vector<4x4xf32>
    %9 = tpu.matmul %8, %1, %cst_7 {dimension_numbers = #tpu.dot_dimension_numbers<[1], [0], [0], [1], [0, 0, 1, 1], [], []>} : vector<4x128xf32>, vector<128x4xf32>, vector<4x4xf32> -> vector<4x4xf32>
    %cst_8 = arith.constant 3.125000e-02 : f32
    %10 = vector.broadcast %cst_8 : f32 to vector<4x4xf32>
    %11 = arith.mulf %9, %10 : vector<4x4xf32>
    %12 = math.sqrt %11 : vector<4x4xf32>
    %cst_9 = arith.constant 9.99999974E-6 : f32
    %13 = vector.broadcast %cst_9 : f32 to vector<4x4xf32>
    %14 = arith.addf %12, %13 : vector<4x4xf32>
    %15 = tpu.reciprocal %14 : vector<4x4xf32> -> vector<4x4xf32>
    %cst_10 = arith.constant dense<0.000000e+00> : vector<4x128xf32>
    %16 = tpu.matmul %15, %2, %cst_10 {dimension_numbers = #tpu.dot_dimension_numbers<[1], [0], [0], [1], [0, 0, 1, 1], [], []>} : vector<4x4xf32>, vector<4x128xf32>, vector<4x128xf32> -> vector<4x128xf32>
    %17 = arith.mulf %7, %16 : vector<4x128xf32>
    %c0_11 = arith.constant 0 : index
    %c0_12 = arith.constant 0 : index
    %18 = vector.load %arg2[%c0_11, %c0_12] : memref<1x128xf32, #tpu.memory_space<vmem>>, vector<1x128xf32>
    %19 = vector.broadcast %18 : vector<1x128xf32> to vector<4x128xf32>
    %20 = arith.mulf %17, %19 : vector<4x128xf32>
    %c0_13 = arith.constant 0 : index
    %c0_14 = arith.constant 0 : index
    %21 = vector.load %arg3[%c0_13, %c0_14] : memref<1x128xf32, #tpu.memory_space<vmem>>, vector<1x128xf32>
    %22 = vector.broadcast %21 : vector<1x128xf32> to vector<4x128xf32>
    %23 = arith.addf %20, %22 : vector<4x128xf32>
    %c0_15 = arith.constant 0 : index
    %c0_16 = arith.constant 0 : index
    %24 = vector.load %arg6[%c0_15, %c0_16] : memref<4x128xf32, #tpu.memory_space<vmem>>, vector<4x128xf32>
    tpu.vector_store %arg6[%c0_15, %c0_16], %23 {strides = array<i32>} : memref<4x128xf32, #tpu.memory_space<vmem>>, vector<4x128xf32>,
    return
  }
  func.func @transform_0(%arg0: i32) -> (i32, i32) {
    %c0_i32 = arith.constant 0 : i32
    %c0_i32_0 = arith.constant 0 : i32
    return %arg0, %c0_i32 : i32, i32
  }
  func.func @transform_1(%arg0: i32) -> (i32, i32) {
    %c0_i32 = arith.constant 0 : i32
    %c0_i32_0 = arith.constant 0 : i32
    %c0_i32_1 = arith.constant 0 : i32
    return %c0_i32, %c0_i32_0 : i32, i32
  }
  func.func @transform_2(%arg0: i32) -> (i32, i32) {
    %c0_i32 = arith.constant 0 : i32
    %c0_i32_0 = arith.constant 0 : i32
    %c0_i32_1 = arith.constant 0 : i32
    return %c0_i32, %c0_i32_0 : i32, i32
  }
  func.func @transform_3(%arg0: i32) -> (i32, i32) {
    %c0_i32 = arith.constant 0 : i32
    %c0_i32_0 = arith.constant 0 : i32
    %c0_i32_1 = arith.constant 0 : i32
    return %c0_i32, %c0_i32_0 : i32, i32
  }
  func.func @transform_4(%arg0: i32) -> (i32, i32) {
    %c0_i32 = arith.constant 0 : i32
    %c0_i32_0 = arith.constant 0 : i32
    %c0_i32_1 = arith.constant 0 : i32
    return %c0_i32, %c0_i32_0 : i32, i32
  }
  func.func @transform_5(%arg0: i32) -> (i32, i32) {
    %c0_i32 = arith.constant 0 : i32
    %c0_i32_0 = arith.constant 0 : i32
    return %arg0, %c0_i32 : i32, i32
  }
}

</mosaic_0001>

<bundles_post_ra>
// kernel: tpu_custom_call.1
= control target key start
LH: loop header
LB: loop body
LE: loop exit
PB: predicated region body
PF: predicated region fallthrough
CT: control target
= control target key end

     0   :  { %10 = vsyncpa [#allocation3], 0  ;;  %s907_s0 = inlined_call_operand.hbm [shape: f32[4,128], index: 0, kind: input, shape index: {}]   ;;  %s908_s1 = inlined_call_operand.hbm [shape: f32[1,128], index: 1, kind: input, shape index: {}]   ;;  %s909_s2 = inlined_call_operand.hbm [shape: f32[1,128], index: 2, kind: input, shape index: {}]   ;;  %s910_s3 = inlined_call_operand.hbm [shape: f32[128,4], index: 3, kind: input, shape index: {}]   ;;  %s911_s4 = inlined_call_operand.hbm [shape: f32[4,128], index: 4, kind: input, shape index: {}]   ;;  %s912_s5 = inlined_call_operand.hbm [shape: f32[4,128], index: 5, kind: output, shape index: {}]  }
   0x1   :  { %11 = vsyncpa [#allocation6], 0 }
   0x2   :  { %12 = vsyncpa [#allocation9], 0 }
   0x3   :  { %13 = vsyncpa [#allocation4], 0  ;;  %s765_s18 = smov [#allocation5]   ;;  %s766_s20 = smov [#allocation8]  }
   0x4   :  { %s30_s19 = sshll.u32 %s765_s18, 4  ;;  %s49_s21 = sshll.u32 %s766_s20, 4  ;;  %s31_s19 = int_to_ptr.vmem [resolvable:$true] %s30_s19  ;;  %s806_s21 = int_to_ptr.vmem [resolvable:$true] %s49_s21 }
   0x5   :  { %s625_s24 = scalar_lea.hbm %s908_s1, 16 }
   0x6   :  { %p626_p0 = scmp.ne.s32.totalorder %s908_s1, %s625_s24  ;;  %p629_p1 = scmp.lt.u32.totalorder %s625_s24, %s908_s1 }
   0x8   :  { %p631_p2 = pnand %p629_p1, %p626_p0 }
   0xa   :  { %634 = shalt.err (!%p631_p2)
}
   0xb   :  { %s635_s29 = scalar_lea.vmem %s31_s19, 16  ;;  %s639_s30 = scalar_lea.vmem %s31_s19, 32 }
   0xc   :  { %p636_p3 = scmp.ne.s32.totalorder %s31_s19, %s635_s29  ;;  %p640_p4 = scmp.lt.s32.totalorder %s31_s19, %s31_s19 }
   0xd   :  { %p641_p5 = scmp.lt.s32.totalorder %s639_s30, %s635_s29 }
   0xf   :  { %p642_p6 = por %p641_p5, %p640_p4 }
  0x11   :  { %p643_p7 = pnand %p642_p6, %p636_p3 }
  0x13   :  { %646 = shalt.err (!%p643_p7)
}
  0x14   :  { %33 = dma.hbm_to_vmem [thread:$0]  %s908_s1, 16, %s31_s19, [#allocation6]  }
  0x15   :  { %s647_s10 = scalar_lea.hbm %s910_s3, 2048 }
  0x16   :  { %p648_p8 = scmp.ne.s32.totalorder %s910_s3, %s647_s10  ;;  %p651_p9 = scmp.lt.u32.totalorder %s647_s10, %s910_s3 }
  0x18   :  { %p653_p10 = pnand %p651_p9, %p648_p8 }
  0x1a   :  { %656 = shalt.err (!%p653_p10)
}
  0x1b   :  { %s657_s15 = scalar_lea.vmem %s806_s21, 2048  ;;  %p662_p12 = scmp.lt.s32.totalorder %s806_s21, %s806_s21 }
  0x1c   :  { %p658_p11 = scmp.ne.s32.totalorder %s806_s21, %s657_s15  ;;  %p663_p13 = scmp.lt.s32.totalorder %s657_s15, %s657_s15 }
  0x1e   :  { %p664_p0 = por %p663_p13, %p662_p12 }
  0x20   :  { %p665_p1 = pnand %p664_p0, %p658_p11 }
  0x22   :  { %668 = shalt.err (!%p665_p1)
}
  0x23   :  { %s767_s1 = smov 128   ;;  %s768_s16 = smov 8  }
  0x24   :  { %55 = dma.hbm_to_vmem [thread:$0]  %s910_s3, 2048, %s806_s21, [#allocation9], %s767_s1, %s767_s1, %s768_s16  }
  0x25   :  { %s769_s19 = smov [#allocation2]   ;;  %s770_s22 = smov [#allocation7]  }
  0x26   :  { %s20_s20 = sshll.u32 %s769_s19, 4  ;;  %s40_s23 = sshll.u32 %s770_s22, 4  ;;  %s21_s20 = int_to_ptr.vmem [resolvable:$true] %s20_s20  ;;  %s41_s23 = int_to_ptr.vmem [resolvable:$true] %s40_s23 }
  0x27   :  { %s669_s26 = scalar_lea.hbm %s907_s0, 64 }
  0x28   :  { %p670_p2 = scmp.ne.s32.totalorder %s907_s0, %s669_s26  ;;  %p673_p3 = scmp.lt.u32.totalorder %s669_s26, %s907_s0 }
  0x2a   :  { %p675_p4 = pnand %p673_p3, %p670_p2 }
  0x2c   :  { %678 = shalt.err (!%p675_p4)
}
  0x2d   :  { %s679_s3 = scalar_lea.vmem %s21_s20, 64  ;;  %p684_p6 = scmp.lt.s32.totalorder %s21_s20, %s21_s20 }
  0x2e   :  { %p680_p5 = scmp.ne.s32.totalorder %s21_s20, %s679_s3  ;;  %p685_p7 = scmp.lt.s32.totalorder %s679_s3, %s679_s3 }
  0x30   :  { %p686_p8 = por %p685_p7, %p684_p6 }
  0x32   :  { %p687_p9 = pnand %p686_p8, %p680_p5 }
  0x34   :  { %690 = shalt.err (!%p687_p9)
}
  0x35   :  { %23 = dma.hbm_to_vmem [thread:$0]  %s907_s0, 64, %s21_s20, [#allocation3]  }
  0x36   :  { %s691_s9 = scalar_lea.hbm %s909_s2, 16 }
  0x37   :  { %p692_p10 = scmp.ne.s32.totalorder %s909_s2, %s691_s9  ;;  %p695_p11 = scmp.lt.u32.totalorder %s691_s9, %s909_s2 }
  0x39   :  { %p697_p12 = pnand %p695_p11, %p692_p10 }
  0x3b   :  { %700 = shalt.err (!%p697_p12)
}
  0x3c   :  { %s701_s14 = scalar_lea.vmem %s41_s23, 16  ;;  %s705_s15 = scalar_lea.vmem %s41_s23, 32 }
  0x3d   :  { %p702_p13 = scmp.ne.s32.totalorder %s41_s23, %s701_s14  ;;  %p706_p0 = scmp.lt.s32.totalorder %s41_s23, %s41_s23 }
  0x3e   :  { %p707_p1 = scmp.lt.s32.totalorder %s705_s15, %s701_s14 }
  0x40   :  { %p708_p2 = por %p707_p1, %p706_p0 }
  0x42   :  { %p709_p3 = pnand %p708_p2, %p702_p13 }
  0x44   :  { %712 = shalt.err (!%p709_p3)
}
  0x45   :  { %43 = dma.hbm_to_vmem [thread:$0]  %s909_s2, 16, %s41_s23, [#allocation6]  }
  0x46   :  { %s771_s16 = smov [#allocation10]   ;;  %s713_s20 = scalar_lea.hbm %s911_s4, 64 }
  0x47   :  { %s62_s17 = sshll.u32 %s771_s16, 4  ;;  %p714_p4 = scmp.ne.s32.totalorder %s911_s4, %s713_s20  ;;  %s63_s17 = int_to_ptr.vmem [resolvable:$true] %s62_s17 }
  0x48   :  { %p717_p5 = scmp.lt.u32.totalorder %s713_s20, %s911_s4 }
  0x4a   :  { %p719_p6 = pnand %p717_p5, %p714_p4 }
  0x4c   :  { %722 = shalt.err (!%p719_p6)
}
  0x4d   :  { %s723_s27 = scalar_lea.vmem %s63_s17, 64  ;;  %p728_p8 = scmp.lt.s32.totalorder %s63_s17, %s63_s17 }
  0x4e   :  { %p724_p7 = scmp.ne.s32.totalorder %s63_s17, %s723_s27  ;;  %p729_p9 = scmp.lt.s32.totalorder %s723_s27, %s723_s27 }
  0x50   :  { %p730_p10 = por %p729_p9, %p728_p8 }
  0x52   :  { %p731_p11 = pnand %p730_p10, %p724_p7 }
  0x54   :  { %734 = shalt.err (!%p731_p11)
}
  0x55   :  { %65 = dma.hbm_to_vmem [thread:$0]  %s911_s4, 64, %s63_s17, [#allocation9]  }
  0x56   :  { %757 = dma.done.wait [#allocation3], 64  }
  0x57   :  { %758 = vsyncadd [#allocation3], 4294967232 }
  0x58   :  { %759 = dma.done.wait [#allocation6], 32  }
  0x59   :  { %760 = vsyncadd [#allocation6], 4294967264 }
  0x5a   :  { %761 = dma.done.wait [#allocation9], 2112  }
  0x5b   :  { %762 = vsyncadd [#allocation9], 4294965184  ;;  %v772_v0 = vmov 0.0|0.0   ;;  %vm773_vm0 = vmmov 0   ;;  %v774_v1 = vmov 0.0   ;;  %v82_v2 = vld [vmem:[#allocation8] sm:$0xff] }
  0x5c   :  { %562 = vmatprep.subr.bf16.mxu0 %v772_v0  ;;  %514 = vmatprep.mubr.msk.f32.mxu0 %vm773_vm0, %v774_v1  ;;  %v83_v3 = vld [vmem:[#allocation8 + $0x8] sm:$0xff]  ;;  %v84_v4 = vld [vmem:[#allocation8 + $0x10] sm:$0xff]  ;;  %v85_v6 = vld [vmem:[#allocation8 + $0x18] sm:$0xff]  ;;  %vm174_vm1 = vcmask 1043456   ;;  %vm170_vm2 = vcmask 31744   ;;  %s775_s4 = smov [#allocation11]  }
  0x5d   :  { %517 = vmatprep.subr.mxu1 %v774_v1  ;;  %519 = vmatprep.mubr.msk.f32.mxu1 %vm773_vm0, %v774_v1  ;;  %v563_v5 = vpack.c.bf16 %v83_v3, %v82_v2  ;;  %v566_v7 = vpack.c.bf16 %v85_v6, %v84_v4  ;;  %v86_v8 = vld [vmem:[#allocation8 + $0x20] sm:$0xff]  ;;  %v87_v9 = vld [vmem:[#allocation8 + $0x28] sm:$0xff]  ;;  %v88_v11 = vld [vmem:[#allocation8 + $0x30] sm:$0xff]  ;;  %s427_s28 = sshll.u32 %s775_s4, 4  ;;  %s428_s28 = int_to_ptr.vmem [resolvable:$true] %s427_s28 }
  0x5e   :  { %v569_v10 = vpack.c.bf16 %v87_v9, %v86_v8  ;;  %v89_v12 = vld [vmem:[#allocation8 + $0x38] sm:$0xff]  ;;  %v90_v14 = vld [vmem:[#allocation8 + $0x40] sm:$0xff]  ;;  %v91_v15 = vld [vmem:[#allocation8 + $0x48] sm:$0xff]  ;;  %s735_s29 = scalar_lea.vmem %s428_s28, 64  ;;  %p740_p13 = scmp.lt.s32.totalorder %s428_s28, %s428_s28 }
  0x5f   :  { %564 = vmatpush3.bf16.msra.mxu0 %v563_v5  ;;  %v572_v13 = vpack.c.bf16 %v89_v12, %v88_v11  ;;  %v575_v16 = vpack.c.bf16 %v91_v15, %v90_v14  ;;  %v92_v17 = vld [vmem:[#allocation8 + $0x50] sm:$0xff]  ;;  %v93_v18 = vld [vmem:[#allocation8 + $0x58] sm:$0xff]  ;;  %v94_v20 = vld [vmem:[#allocation8 + $0x60] sm:$0xff]  ;;  %p736_p12 = scmp.ne.s32.totalorder %s428_s28, %s735_s29  ;;  %p741_p0 = scmp.lt.s32.totalorder %s735_s29, %s735_s29 }
  0x60   :  { %565 = vmatprep.subr.bf16.mxu0 %v772_v0  ;;  %v578_v19 = vpack.c.bf16 %v93_v18, %v92_v17  ;;  %v95_v21 = vld [vmem:[#allocation8 + $0x68] sm:$0xff]  ;;  %v96_v23 = vld [vmem:[#allocation8 + $0x70] sm:$0xff]  ;;  %v97_v24 = vld [vmem:[#allocation8 + $0x78] sm:$0xff] }
  0x61   :  { %v581_v22 = vpack.c.bf16 %v95_v21, %v94_v20  ;;  %v584_v25 = vpack.c.bf16 %v97_v24, %v96_v23  ;;  %v81_v26 = vld [vmem:[#allocation2] sm:$0xf]  ;;  %v98_v27 = vld [vmem:[#allocation10] sm:$0xf]  ;;  %v442_v46 = vld [vmem:[#allocation5] ss:$0 sm:$0xff]  ;;  %p742_p1 = por %p741_p0, %p740_p13 }
  0x62   :  { %518 = vmatpush3.msk.msra.mxu1 %vm174_vm1, %v98_v27  ;;  %v443_v49 = vld [vmem:[#allocation7] ss:$0 sm:$0xff] }
  0x63   :  { %567 = vmatpush3.bf16.msra.mxu0 %v566_v7  ;;  %586 = vmatprep.subr.bf16.mxu1 %v772_v0  ;;  %p743_p2 = pnand %p742_p1, %p736_p12 }
  0x64   :  { %568 = vmatprep.subr.bf16.mxu0 %v772_v0 }
  0x67   :  { %570 = vmatpush3.bf16.msra.mxu0 %v569_v10 }
  0x68   :  { %571 = vmatprep.subr.bf16.mxu0 %v772_v0 }
  0x6b   :  { %573 = vmatpush3.bf16.msra.mxu0 %v572_v13 }
  0x6c   :  { %574 = vmatprep.subr.bf16.mxu0 %v772_v0 }
  0x6f   :  { %576 = vmatpush3.bf16.msra.mxu0 %v575_v16 }
  0x70   :  { %577 = vmatprep.subr.bf16.mxu0 %v772_v0 }
  0x73   :  { %579 = vmatpush3.bf16.msra.mxu0 %v578_v19 }
  0x74   :  { %580 = vmatprep.subr.bf16.mxu0 %v772_v0 }
  0x77   :  { %582 = vmatpush3.bf16.msra.mxu0 %v581_v22 }
  0x78   :  { %583 = vmatprep.subr.bf16.mxu0 %v772_v0 }
  0x7b   :  { %585 = vmatpush3.bf16.msra.mxu0 %v584_v25 }
  0x7c   :  { %557 = vmatprep.subr.mxu0 %v774_v1 }
  0x7e   :  { %515 = vmatmul.mubr.f32.vlgmr.msra.gmra.mrb[0].mxu0 %v81_v26 }
  0x7f   :  { %559 = vmatprep.mubr.msk.f32.mxu0 %vm773_vm0, %v774_v1  ;;  %558 = vmatpush3.msk.msra.mxu0 %vm174_vm1, %v98_v27 }
 0x151   :  { %v165_v28 = vpop.f32.mrb[0].mxu0 }
 0x152   :  { %v169_v29 = vmul.f32 0.03125, %v165_v28  ;;  %v516_v30 = vpop.f32.mrb[1].mxu0 }
 0x154   :  { %520 = vmatmul.mubr.msk.f32.vlgmr.msra.gmra.mrb[0].mxu1 %vm170_vm2, %v169_v29 }
 0x155   :  { %588 = vmatpush3.bf16.msra.mxu1 %v563_v5  ;;  %554 = vmatprep.mubr.msk.f32.mxu1 %vm773_vm0, %v774_v1 }
 0x156   :  { %589 = vmatprep.subr.bf16.mxu1 %v772_v0 }
 0x159   :  { %591 = vmatpush3.bf16.msra.mxu1 %v566_v7 }
 0x15a   :  { %592 = vmatprep.subr.bf16.mxu1 %v772_v0 }
 0x15d   :  { %594 = vmatpush3.bf16.msra.mxu1 %v569_v10 }
 0x15e   :  { %595 = vmatprep.subr.bf16.mxu1 %v772_v0 }
 0x161   :  { %597 = vmatpush3.bf16.msra.mxu1 %v572_v13 }
 0x162   :  { %598 = vmatprep.subr.bf16.mxu1 %v772_v0 }
 0x165   :  { %600 = vmatpush3.bf16.msra.mxu1 %v575_v16 }
 0x166   :  { %601 = vmatprep.subr.bf16.mxu1 %v772_v0 }
 0x169   :  { %603 = vmatpush3.bf16.msra.mxu1 %v578_v19 }
 0x16a   :  { %604 = vmatprep.subr.bf16.mxu1 %v772_v0 }
 0x16d   :  { %606 = vmatpush3.bf16.msra.mxu1 %v581_v22 }
 0x16e   :  { %607 = vmatprep.subr.bf16.mxu1 %v772_v0 }
 0x171   :  { %609 = vmatpush3.bf16.msra.mxu1 %v584_v25 }
 0x227   :  { %v244_v31 = vpop.f32.mrb[0].mxu1 }
 0x228   :  { %v248_v32 = vsub.f32 %v81_v26, %v244_v31  ;;  %v521_v33 = vpop.f32.mrb[1].mxu1 }
 0x22a   :  { %v249_v34 = vmul.f32 %v248_v32, %v248_v32 }
 0x22c   :  { %555 = vmatmul.mubr.f32.vlgmr.msra.gmra.mrb[2].mxu1 %v249_v34 }
 0x2ff   :  { %v316_v35 = vpop.f32.mrb[2].mxu1 }
 0x300   :  { %v320_v36 = vmul.f32 0.03125, %v316_v35  ;;  %v556_v37 = vpop.f32.mrb[3].mxu1 }
 0x302   :  { %621 = vrsqrt.f32 %v320_v36  ;;  %vm323_vm3 = vcmp.eq.f32.partialorder %v320_v36, inf  ;;  %v326_v40 = vand.u32 2147483648, %v320_v36  ;;  %vm325_vm4 = vcmp.eq.f32.partialorder %v320_v36, 0.0 }
 0x30c   :  { %v622_v38 = vpop.eup %621 }
 0x30d   :  { %v322_v39 = vmul.f32 %v622_v38, %v320_v36 }
 0x30f   :  { %v324_v41 = vsel %vm323_vm3, %v320_v36, %v322_v39 }
 0x310   :  { %v327_v42 = vsel %vm325_vm4, %v326_v40, %v324_v41 }
 0x311   :  { %v328_v43 = vadd.f32 1e-05, %v327_v42 }
 0x313   :  { %623 = vrcp.f32 %v328_v43 }
 0x31d   :  { %v624_v44 = vpop.eup %623 }
 0x31e   :  { %560 = vmatmul.mubr.msk.f32.vlgmr.msra.gmra.mrb[2].mxu0 %vm170_vm2, %v624_v44 }
 0x3f1   :  { %v399_v45 = vpop.f32.mrb[2].mxu0 }
 0x3f2   :  { %v403_v47 = vmul.f32 %v399_v45, %v248_v32  ;;  %v561_v48 = vpop.f32.mrb[3].mxu0 }
 0x3f4   :  { %v411_v50 = vmul.f32 %v442_v46, %v403_v47 }
 0x3f6   :  { %v419_v51 = vadd.f32 %v443_v49, %v411_v50 }
 0x3f8   :  { %420 = vst [vmem:[#allocation11] sm:$0xf] %v419_v51 }
 0x3f9   :  { %746 = shalt.err (!%p743_p2)
}
 0x3fa   :  { %s747_s21 = scalar_lea.hbm %s912_s5, 64 }
 0x3fb   :  { %p748_p3 = scmp.ne.s32.totalorder %s912_s5, %s747_s21  ;;  %p751_p4 = scmp.lt.u32.totalorder %s747_s21, %s912_s5 }
 0x3fd   :  { %p753_p5 = pnand %p751_p4, %p748_p3 }
 0x3ff   :  { %756 = shalt.err (!%p753_p5)
}
 0x400   :  { %430 = dma.vmem_to_hbm [thread:$0]  %s428_s28, 64, %s912_s5, [#allocation4]  }
 0x401   :  { %763 = dma.done.wait [#allocation4], 64  }
 0x402   :  { %764 = vsyncadd [#allocation4], 4294967232 }
 0x403   :  { %434 = vsyncpa [#allocation3], 1 }
 0x404   :  { %435 = vsyncpa [#allocation6], 1 }
 0x405   :  { %436 = vsyncpa [#allocation9], 1 }
 0x406   :  { %437 = vsyncpa [#allocation4], 1 }

</bundles_post_ra>
